<compile_context>
chip_gen: v6e
topology: v6e:2x2x1
jax: 0.10.0
libtpu: 0.0.40
codegen_flags: <defaults>
</compile_context>

<pallas_src>
import jax
import jax.numpy as jnp
from jax.experimental import pallas as pl
from jax.experimental.pallas import tpu as pltpu

_LANE = 128                              # vreg lane width
_MAX_LANES = 4096                        # widest lane-dense view considered (32 * 128)
_TARGET_BLOCK_BYTES = 2 * 1024 * 1024    # ~2 MiB blocks: 85%+ HBM roofline regime
_VMEM_LIMIT_BYTES = 16 * 1024 * 1024     # in+out, double-buffered 2 MiB blocks ~= 8 MiB


# ---------------------------------------------------------------------------
# Primary path: zero-copy aliasing no-op.
# ---------------------------------------------------------------------------
def _noop_kernel(x_ref, o_ref):
    # Output is aliased to the input buffer (input_output_aliases={0: 0}), so
    # the output already holds x.  Nothing to do: no DMA, no VMEM, no grid.
    del x_ref, o_ref


def identity(x):
    """Identity forward.  Output aliases the input buffer (zero HBM traffic
    when the caller donates `x`; XLA inserts at most one copy otherwise)."""
    return pl.pallas_call(
        _noop_kernel,
        out_shape=jax.ShapeDtypeStruct(x.shape, x.dtype),
        in_specs=[pl.BlockSpec(memory_space=pl.ANY)],
        out_specs=pl.BlockSpec(memory_space=pl.ANY),
        input_output_aliases={0: 0},
    )(x)


# ---------------------------------------------------------------------------
# Fallback path: fresh-buffer copy (for callers that cannot alias/donate).
# ---------------------------------------------------------------------------
def _copy_kernel(x_ref, o_ref):
    o_ref[...] = x_ref[...]


def _lane_dense_width(n):
    """Largest multiple-of-128 lane width (<= _MAX_LANES) that divides n."""
    lanes = _MAX_LANES
    while lanes >= _LANE:
        if n % lanes == 0:
            return lanes
        lanes -= _LANE
    return 0


def identity_copy(x):
    """Identity that materializes a fresh output buffer via a lane-dense,
    tiled, double-buffered Pallas copy (no wrapper-side pad/slice)."""
    orig_shape = x.shape
    n = x.size
    if n == 0:
        return x

    lanes = _lane_dense_width(n)
    if lanes == 0:
        # Element count not a multiple of 128: single whole-array block
        # (block_shape == full array dims satisfies the (8,128) rule).
        # TODO(synk): tile ragged sizes with an in-kernel masked tail store if
        # such inputs ever exceed a few MiB.
        return pl.pallas_call(
            _copy_kernel,
            out_shape=jax.ShapeDtypeStruct(orig_shape, x.dtype),
        )(x)

    rows = n // lanes
    x2d = x.reshape(rows, lanes)  # pure view change: no pad, no extra HBM copy

    itemsize = jnp.dtype(x.dtype).itemsize
    target_rows = max(1, _TARGET_BLOCK_BYTES // (lanes * itemsize))
    if target_rows >= rows:
        tile_rows = rows                                  # full dim -> always legal
    else:
        tile_rows = min(rows, max(8, (target_rows // 8) * 8))  # multiple of 8

    grid = (pl.cdiv(rows, tile_rows),)  # ragged last block is masked by Pallas

    out2d = pl.pallas_call(
        _copy_kernel,
        out_shape=jax.ShapeDtypeStruct((rows, lanes), x.dtype),
        grid_spec=pl.GridSpec(
            grid=grid,
            in_specs=[pl.BlockSpec((tile_rows, lanes), lambda i: (i, 0))],
            out_specs=pl.BlockSpec((tile_rows, lanes), lambda i: (i, 0)),
        ),
        compiler_params=pltpu.CompilerParams(
            dimension_semantics=("parallel",),   # v7x: split rows across 2 TCs
            vmem_limit_bytes=_VMEM_LIMIT_BYTES,  # safe on v5e/v6e/v7x
        ),
    )(x2d)
    return out2d.reshape(orig_shape)


if __name__ == "__main__":
    key = jax.random.PRNGKey(0)
    N, C, H, W = 2, 4, 16, 16
    x = jax.random.normal(key, (N, C, H, W), jnp.float32)

    # Primary path: aliasing no-op kernel.
    out = jax.block_until_ready(jax.jit(identity)(x))
    assert out.shape == x.shape, out.shape
    assert out.dtype == x.dtype, out.dtype
    assert bool(jnp.array_equal(out, x, equal_nan=True)), "identity (alias) mismatch"

    # Fallback path: fresh-buffer tiled copy kernel.
    out_copy = jax.block_until_ready(jax.jit(identity_copy)(x))
    assert out_copy.shape == x.shape, out_copy.shape
    assert out_copy.dtype == x.dtype, out_copy.dtype
    assert bool(jnp.array_equal(out_copy, x, equal_nan=True)), "identity (copy) mismatch"

    print("KERNEL_OK")
</pallas_src>

<mosaic_0001>
module attributes {stable_mosaic.version = 11 : i64} {
  func.func @_noop_kernel(%arg0: memref<2x4x16x16xf32, #tpu.memory_space<any>>, %arg1: memref<2x4x16x16xf32, #tpu.memory_space<any>>) attributes {dimension_semantics = [], scalar_prefetch = 0 : i64, scratch_operands = 0 : i64, tpu.core_type = #tpu.core_type<tc>} {
    return
  }
}

</mosaic_0001>

<bundles_post_ra>
// kernel: identity.1
= control target key start
LH: loop header
LB: loop body
LE: loop exit
PB: predicated region body
PF: predicated region fallthrough
CT: control target
= control target key end

     0   :  { %s16_s0 = inlined_call_operand.hbm [shape: f32[2,4,16,16], index: 0, kind: input, shape index: {}, may-alias: {0,1}]   ;;  %s17_s1 = inlined_call_operand.hbm [shape: f32[2,4,16,16], index: 1, kind: output, shape index: {}, may-alias: {0,1}]  }

</bundles_post_ra>
